<compile_context>
chip_gen: v6e
topology: v6e:2x2x1
jax: 0.10.0
libtpu: 0.0.40
codegen_flags: <defaults>
</compile_context>

<pallas_src>
import jax
import jax.numpy as jnp
from jax.experimental import pallas as pl
from jax.experimental.pallas import tpu as pltpu


# --------------------------------------------------------------------------
# Kernels
# --------------------------------------------------------------------------
def _linear_relu_kernel_1shot(x_ref, w_ref, b_ref, o_ref):
    # Whole K reduction in one MXU pass: no accumulator scratch needed.
    acc = jnp.dot(x_ref[...], w_ref[...], preferred_element_type=jnp.float32)
    o_ref[...] = jnp.maximum(acc + b_ref[...], 0.0).astype(o_ref.dtype)


def _linear_relu_kernel_acc(x_ref, w_ref, b_ref, o_ref, acc_ref):
    # K-innermost reduction carried in an f32 VMEM accumulator.
    k = pl.program_id(2)

    @pl.when(k == 0)
    def _():
        acc_ref[...] = jnp.zeros_like(acc_ref)

    acc_ref[...] += jnp.dot(
        x_ref[...], w_ref[...], preferred_element_type=jnp.float32
    )

    @pl.when(k == pl.num_programs(2) - 1)
    def _():
        # Epilogue: bias broadcast over rows + ReLU, once per (i, j) tile.
        o_ref[...] = jnp.maximum(acc_ref[...] + b_ref[...], 0.0).astype(o_ref.dtype)


# --------------------------------------------------------------------------
# Tile selection (generation-aware)
# --------------------------------------------------------------------------
def _round_up(x, m):
    return ((x + m - 1) // m) * m


def _tpu_generation():
    try:
        kind = jax.devices()[0].device_kind.lower()
    except Exception:
        return "unknown"
    if "v7" in kind:
        return "v7x"
    if "v6" in kind:
        return "v6e"
    if "v5" in kind:
        return "v5e"
    return "unknown"


# (tm, tn, tk, vmem_limit_bytes, n_tensorcores)
# bf16 ridge points: v6e ~650 flop/B -> 1024x2048; v7x ~310 flop/B (and only
# 64 MiB physical VMEM) -> 512x1024; v5e ~240 flop/B -> 512x512.
_TILE_TABLE = {
    "v6e":     (1024, 2048, 1024, 100 << 20, 1),
    "v7x":     (512,  1024, 1024, 48 << 20,  2),
    "v5e":     (512,  512,  1024, 24 << 20,  1),
    "unknown": (512,  512,  1024, 32 << 20,  1),
}


def _choose_tiles(M, K, N, compute_dtype):
    tm_b, tn_b, tk_b, vmem_limit, n_cores = _TILE_TABLE.get(
        _tpu_generation(), _TILE_TABLE["unknown"])
    itemsize = jnp.dtype(compute_dtype).itemsize
    m_align = {4: 8, 2: 16, 1: 32}.get(itemsize, 8)   # native sublane packing
    tm = min(tm_b, _round_up(max(M, 1), m_align))
    tk = min(tk_b, _round_up(K, 128))
    tn = min(tn_b, _round_up(N, 128))
    return tm, tn, tk, vmem_limit, n_cores


def _split_for_cores(tm, tn, M_pad, N_pad, n_cores):
    # On 2-TC chips make sure the parallel grid has >= n_cores (i, j) blocks;
    # prefer shrinking tn (N_pad stays divisible) so small-M GEMMs use both.
    if n_cores < 2 or (M_pad // tm) * (N_pad // tn) >= n_cores:
        return tn
    for cand in range(tn - 128, 127, -128):
        if N_pad % cand == 0 and (M_pad // tm) * (N_pad // cand) >= n_cores:
            return cand
    return tn


# --------------------------------------------------------------------------
# Wrappers
# --------------------------------------------------------------------------
def prepack_weight(weight, bias, *, compute_dtype=jnp.bfloat16):
    """Transpose / cast / pad the weight and bias ONCE; reuse across calls.

    weight: (OUT, IN) PyTorch nn.Linear convention; bias: (OUT,)
    """
    out_features, in_features = weight.shape
    _, tn, tk, _, _ = _choose_tiles(1, in_features, out_features, compute_dtype)
    K_pad = _round_up(in_features, tk)
    N_pad = _round_up(out_features, tn)

    w_t = weight.T.astype(compute_dtype)            # (IN, OUT), lane-dense x @ w
    if (K_pad, N_pad) != w_t.shape:
        w_t = jnp.pad(w_t, ((0, K_pad - in_features), (0, N_pad - out_features)))
    b_p = bias.astype(jnp.float32)
    if N_pad != out_features:
        b_p = jnp.pad(b_p, (0, N_pad - out_features))
    b_p = b_p.reshape(1, N_pad)

    return dict(w=w_t, b=b_p, tn=tn, tk=tk,
                in_features=in_features, out_features=out_features,
                compute_dtype=compute_dtype)


def linear_relu_packed(x, packed):
    """y = relu(x @ W.T + b) using a prepacked weight (see prepack_weight)."""
    orig_shape = x.shape
    in_features = packed["in_features"]
    out_features = packed["out_features"]
    compute_dtype = packed["compute_dtype"]
    w_p, b_p = packed["w"], packed["b"]
    tn, tk = packed["tn"], packed["tk"]
    K_pad, N_pad = w_p.shape
    out_dtype = x.dtype

    x2d = x.reshape(-1, in_features)
    M = x2d.shape[0]

    tm, _, _, vmem_limit, n_cores = _choose_tiles(
        M, in_features, out_features, compute_dtype)
    M_pad = _round_up(M, tm)

    x2d = x2d.astype(compute_dtype)
    if (M_pad, K_pad) != x2d.shape:
        # Zero K-padding keeps the reduction exact; extra M rows are sliced off.
        # TODO(synk): for decode-sized M, handle the M remainder with a partial
        # last block instead of re-writing the activations to HBM.
        x2d = jnp.pad(x2d, ((0, M_pad - M), (0, K_pad - in_features)))

    tn = _split_for_cores(tm, tn, M_pad, N_pad, n_cores)
    grid_m, grid_n, grid_k = M_pad // tm, N_pad // tn, K_pad // tk

    cost = pl.CostEstimate(
        flops=2 * M * in_features * out_features,
        transcendentals=0,
        bytes_accessed=(x2d.size * x2d.dtype.itemsize
                        + w_p.size * w_p.dtype.itemsize
                        + M_pad * N_pad * jnp.dtype(out_dtype).itemsize))

    # TODO(synk): if the weight DMA is still exposed on v6e after the tile
    # bump, add pipeline_mode=pl.Buffered(3) to the weight BlockSpec.
    if grid_k == 1:
        # Whole K fits in one tile: no accumulator, no K grid axis at all.
        out = pl.pallas_call(
            _linear_relu_kernel_1shot,
            out_shape=jax.ShapeDtypeStruct((M_pad, N_pad), out_dtype),
            grid_spec=pltpu.PrefetchScalarGridSpec(
                num_scalar_prefetch=0,
                grid=(grid_m, grid_n),
                in_specs=[
                    pl.BlockSpec((tm, K_pad), lambda i, j: (i, 0)),
                    pl.BlockSpec((K_pad, tn), lambda i, j: (0, j)),
                    pl.BlockSpec((1, tn), lambda i, j: (0, j)),
                ],
                out_specs=pl.BlockSpec((tm, tn), lambda i, j: (i, j)),
            ),
            compiler_params=pltpu.CompilerParams(
                dimension_semantics=("parallel", "parallel"),
                vmem_limit_bytes=vmem_limit),
            cost_estimate=cost,
        )(x2d, w_p, b_p)
    else:
        out = pl.pallas_call(
            _linear_relu_kernel_acc,
            out_shape=jax.ShapeDtypeStruct((M_pad, N_pad), out_dtype),
            grid_spec=pltpu.PrefetchScalarGridSpec(
                num_scalar_prefetch=0,
                grid=(grid_m, grid_n, grid_k),
                in_specs=[
                    pl.BlockSpec((tm, tk), lambda i, j, k: (i, k)),
                    pl.BlockSpec((tk, tn), lambda i, j, k: (k, j)),
                    pl.BlockSpec((1, tn), lambda i, j, k: (0, j)),
                ],
                out_specs=pl.BlockSpec((tm, tn), lambda i, j, k: (i, j)),
                scratch_shapes=[pltpu.VMEM((tm, tn), jnp.float32)],
            ),
            compiler_params=pltpu.CompilerParams(
                dimension_semantics=("parallel", "parallel", "arbitrary"),
                vmem_limit_bytes=vmem_limit),
            cost_estimate=cost,
        )(x2d, w_p, b_p)

    out = out[:M, :out_features]
    return out.reshape(*orig_shape[:-1], out_features)


def linear_relu(x, weight, bias, *, compute_dtype=jnp.bfloat16):
    """One-call convenience wrapper (prepacks the weight every call).

    For repeated calls with the same weight, call prepack_weight() once and
    use linear_relu_packed() so the transpose/cast/pad is not re-done per call.
    compute_dtype=None keeps the input dtype (e.g. exact f32 math).
    """
    if compute_dtype is None:
        compute_dtype = x.dtype
    packed = prepack_weight(weight, bias, compute_dtype=compute_dtype)
    return linear_relu_packed(x, packed)


# --------------------------------------------------------------------------
# Self-test
# --------------------------------------------------------------------------
if __name__ == "__main__":
    key = jax.random.PRNGKey(0)
    k_x, k_w, k_b = jax.random.split(key, 3)

    batch, seq, in_features, out_features = 2, 8, 32, 32

    x = jax.random.normal(k_x, (batch, seq, in_features), dtype=jnp.float32)
    # Deterministic "uniform(-1/sqrt(in), 1/sqrt(in))" init, like nn.Linear.
    bound = 1.0 / jnp.sqrt(jnp.float32(in_features))
    weight = jax.random.uniform(k_w, (out_features, in_features),
                                minval=-bound, maxval=bound, dtype=jnp.float32)
    bias = jax.random.uniform(k_b, (out_features,),
                              minval=-bound, maxval=bound, dtype=jnp.float32)

    y_ref = jnp.maximum(jnp.einsum("bsi,oi->bso", x, weight) + bias, 0.0)

    # Default path: bf16 MXU operands, f32 accumulation (widened tolerance).
    packed = prepack_weight(weight, bias)              # hoisted once, reused below
    y = jax.block_until_ready(linear_relu_packed(x, packed))
    assert y.shape == (batch, seq, out_features)
    assert jnp.allclose(y, y_ref, atol=3e-2, rtol=3e-2)

    # Exact f32 compute path.
    y32 = jax.block_until_ready(linear_relu(x, weight, bias,
                                            compute_dtype=jnp.float32))
    assert jnp.allclose(y32, y_ref, atol=1e-5, rtol=1e-5)

    # A shape that is NOT a tile multiple (pad/slice path), reusing the prepack.
    x2 = jax.random.normal(k_x, (3, 5, in_features), dtype=jnp.float32)
    y2 = jax.block_until_ready(linear_relu_packed(x2, packed))
    y2_ref = jnp.maximum(jnp.einsum("bsi,oi->bso", x2, weight) + bias, 0.0)
    assert jnp.allclose(y2, y2_ref, atol=3e-2, rtol=3e-2)

    print("KERNEL_OK")
</pallas_src>

<mosaic_0001>
module attributes {stable_mosaic.version = 11 : i64} {
  func.func @_linear_relu_kernel_1shot(%arg0: i32, %arg1: i32, %arg2: memref<16x128xbf16, #tpu.memory_space<vmem>>, %arg3: memref<128x128xbf16, #tpu.memory_space<vmem>>, %arg4: memref<1x128xf32, #tpu.memory_space<vmem>>, %arg5: memref<16x128xf32, #tpu.memory_space<vmem>>) attributes {dimension_semantics = [#tpu.dimension_semantics<parallel>, #tpu.dimension_semantics<parallel>], iteration_bounds = array<i64: 1, 1>, scalar_prefetch = 0 : i64, scratch_operands = 0 : i64, tpu.core_type = #tpu.core_type<tc>, window_params = [{transform_indices = @transform_0, window_bounds = array<i64: 16, 128>}, {transform_indices = @transform_1, window_bounds = array<i64: 128, 128>}, {transform_indices = @transform_2, window_bounds = array<i64: 1, 128>}, {transform_indices = @transform_3, window_bounds = array<i64: 16, 128>}]} {
    %c0 = arith.constant 0 : index
    %c0_0 = arith.constant 0 : index
    %0 = vector.load %arg2[%c0, %c0_0] : memref<16x128xbf16, #tpu.memory_space<vmem>>, vector<16x128xbf16>
    %c0_1 = arith.constant 0 : index
    %c0_2 = arith.constant 0 : index
    %1 = vector.load %arg3[%c0_1, %c0_2] : memref<128x128xbf16, #tpu.memory_space<vmem>>, vector<128x128xbf16>
    %cst = arith.constant dense<0.000000e+00> : vector<16x128xf32>
    %2 = tpu.matmul %0, %1, %cst {dimension_numbers = #tpu.dot_dimension_numbers<[1], [0], [0], [1], [0, 0, 1, 1], [], []>} : vector<16x128xbf16>, vector<128x128xbf16>, vector<16x128xf32> -> vector<16x128xf32>
    %c0_3 = arith.constant 0 : index
    %c0_4 = arith.constant 0 : index
    %3 = vector.load %arg4[%c0_3, %c0_4] : memref<1x128xf32, #tpu.memory_space<vmem>>, vector<1x128xf32>
    %4 = vector.broadcast %3 : vector<1x128xf32> to vector<16x128xf32>
    %5 = arith.addf %2, %4 : vector<16x128xf32>
    %cst_5 = arith.constant 0.000000e+00 : f32
    %6 = vector.broadcast %cst_5 : f32 to vector<16x128xf32>
    %7 = arith.maximumf %5, %6 : vector<16x128xf32>
    %c0_6 = arith.constant 0 : index
    %c0_7 = arith.constant 0 : index
    %8 = vector.load %arg5[%c0_6, %c0_7] : memref<16x128xf32, #tpu.memory_space<vmem>>, vector<16x128xf32>
    tpu.vector_store %arg5[%c0_6, %c0_7], %7 {strides = array<i32>} : memref<16x128xf32, #tpu.memory_space<vmem>>, vector<16x128xf32>,
    return
  }
  func.func @transform_0(%arg0: i32, %arg1: i32) -> (i32, i32) {
    %c0_i32 = arith.constant 0 : i32
    %c0_i32_0 = arith.constant 0 : i32
    return %arg0, %c0_i32 : i32, i32
  }
  func.func @transform_1(%arg0: i32, %arg1: i32) -> (i32, i32) {
    %c0_i32 = arith.constant 0 : i32
    %c0_i32_0 = arith.constant 0 : i32
    return %c0_i32, %arg1 : i32, i32
  }
  func.func @transform_2(%arg0: i32, %arg1: i32) -> (i32, i32) {
    %c0_i32 = arith.constant 0 : i32
    %c0_i32_0 = arith.constant 0 : i32
    return %c0_i32, %arg1 : i32, i32
  }
  func.func @transform_3(%arg0: i32, %arg1: i32) -> (i32, i32) {
    %c0_i32 = arith.constant 0 : i32
    return %arg0, %arg1 : i32, i32
  }
}

</mosaic_0001>

<bundles_post_ra>
// kernel: tpu_custom_call.1
= control target key start
LH: loop header
LB: loop body
LE: loop exit
PB: predicated region body
PF: predicated region fallthrough
CT: control target
= control target key end

     0   :  { %8 = vsyncpa [#allocation3], 0  ;;  %s350_s0 = inlined_call_operand.hbm [shape: bf16[16,128], index: 0, kind: input, shape index: {}]   ;;  %s351_s1 = inlined_call_operand.hbm [shape: bf16[128,128], index: 1, kind: input, shape index: {}]   ;;  %s352_s2 = inlined_call_operand.vmem [shape: f32[1,128], index: 2, kind: input, shape index: {}]   ;;  %s353_s3 = inlined_call_operand.hbm [shape: f32[16,128], index: 3, kind: output, shape index: {}]  }
   0x1   :  { %9 = vsyncpa [#allocation6], 0 }
   0x2   :  { %10 = vsyncpa [#allocation4], 0  ;;  %s309_s12 = smov [#allocation2]  }
   0x3   :  { %s16_s13 = sshll.u32 %s309_s12, 4  ;;  %s17_s13 = int_to_ptr.vmem [resolvable:$true] %s16_s13 }
   0x4   :  { %s251_s14 = scalar_lea.vmem %s17_s13, 128  ;;  %p256_p1 = scmp.lt.s32.totalorder %s17_s13, %s17_s13 }
   0x5   :  { %p252_p0 = scmp.ne.s32.totalorder %s17_s13, %s251_s14  ;;  %p257_p2 = scmp.lt.s32.totalorder %s251_s14, %s251_s14 }
   0x7   :  { %p258_p3 = por %p257_p2, %p256_p1 }
   0x9   :  { %p259_p4 = pnand %p258_p3, %p252_p0 }
   0xb   :  { %262 = shalt.err (!%p259_p4)
}
   0xc   :  { %s310_s15 = smov 64   ;;  %s311_s16 = smov 4  }
   0xd   :  { %22 = dma.hbm_to_vmem [thread:$0]  %s350_s0, 128, %s17_s13, [#allocation3], %s310_s15, %s310_s15, %s311_s16  }
   0xe   :  { %s312_s19 = smov [#allocation5]  }
   0xf   :  { %s28_s20 = sshll.u32 %s312_s19, 4  ;;  %s29_s20 = int_to_ptr.vmem [resolvable:$true] %s28_s20 }
  0x10   :  { %s271_s21 = scalar_lea.vmem %s29_s20, 1024  ;;  %p276_p6 = scmp.lt.s32.totalorder %s29_s20, %s29_s20 }
  0x11   :  { %p272_p5 = scmp.ne.s32.totalorder %s29_s20, %s271_s21  ;;  %p277_p7 = scmp.lt.s32.totalorder %s271_s21, %s271_s21 }
  0x13   :  { %p278_p8 = por %p277_p7, %p276_p6 }
  0x15   :  { %p279_p9 = pnand %p278_p8, %p272_p5 }
  0x17   :  { %282 = shalt.err (!%p279_p9)
}
  0x18   :  { %34 = dma.hbm_to_vmem [thread:$0]  %s351_s1, 1024, %s29_s20, [#allocation6], %s310_s15, %s310_s15, %s311_s16  }
  0x19   :  { %303 = dma.done.wait [#allocation3], 128  }
  0x1a   :  { %304 = vsyncadd [#allocation3], 4294967168 }
  0x1b   :  { %305 = dma.done.wait [#allocation6], 1024  }
  0x1c   :  { %306 = vsyncadd [#allocation6], 4294966272  ;;  %v313_v0 = vmov 0.0   ;;  %vm314_vm0 = vmmov 0   ;;  %v234_v1 = vld [vmem:[#allocation5 + $0x38] sm:$0xff]   ;;  %v235_v2 = vld [vmem:[#allocation5 + $0x30] sm:$0xff]  }
  0x1d   :  { %205 = vmatprep.subr.bf16.mxu0 %v313_v0  ;;  %221 = vmatprep.mubr.msk.bf16.mxu0 %vm314_vm0, %v313_v0  ;;  %v236_v3 = vld [vmem:[#allocation5 + $0x28] sm:$0xff]   ;;  %v237_v4 = vld [vmem:[#allocation5 + $0x20] sm:$0xff]   ;;  %v238_v5 = vld [vmem:[#allocation5 + $0x18] sm:$0xff]   ;;  %s315_s24 = smov [#allocation7]  }
  0x1e   :  { %206 = vmatpush3.bf16.msra.mxu0 %v234_v1  ;;  %v239_v6 = vld [vmem:[#allocation5 + $0x10] sm:$0xff]   ;;  %v240_v7 = vld [vmem:[#allocation5 + $0x8] sm:$0xff]   ;;  %v241_v8 = vld [vmem:[#allocation5] sm:$0xff]   ;;  %s173_s25 = sshll.u32 %s315_s24, 4  ;;  %s174_s25 = int_to_ptr.vmem [resolvable:$true] %s173_s25 }
  0x1f   :  { %207 = vmatprep.subr.bf16.mxu0 %v313_v0  ;;  %v242_v9 = vld [vmem:[#allocation2] sm:$0xff]   ;;  %s283_s26 = scalar_lea.vmem %s174_s25, 256  ;;  %p288_p11 = scmp.lt.s32.totalorder %s174_s25, %s174_s25 }
  0x20   :  { %v186_v10 = vld [vmem:[%s352_s2] ss:$0 sm:$0xff]  ;;  %p284_p10 = scmp.ne.s32.totalorder %s174_s25, %s283_s26  ;;  %p289_p12 = scmp.lt.s32.totalorder %s283_s26, %s283_s26 }
  0x22   :  { %208 = vmatpush3.bf16.msra.mxu0 %v235_v2  ;;  %p290_p13 = por %p289_p12, %p288_p11 }
  0x23   :  { %209 = vmatprep.subr.bf16.mxu0 %v313_v0 }
  0x24   :  { %p291_p0 = pnand %p290_p13, %p284_p10 }
  0x26   :  { %210 = vmatpush3.bf16.msra.mxu0 %v236_v3 }
  0x27   :  { %211 = vmatprep.subr.bf16.mxu0 %v313_v0 }
  0x2a   :  { %212 = vmatpush3.bf16.msra.mxu0 %v237_v4 }
  0x2b   :  { %213 = vmatprep.subr.bf16.mxu0 %v313_v0 }
  0x2e   :  { %214 = vmatpush3.bf16.msra.mxu0 %v238_v5 }
  0x2f   :  { %215 = vmatprep.subr.bf16.mxu0 %v313_v0 }
  0x32   :  { %216 = vmatpush3.bf16.msra.mxu0 %v239_v6 }
  0x33   :  { %217 = vmatprep.subr.bf16.mxu0 %v313_v0 }
  0x36   :  { %218 = vmatpush3.bf16.msra.mxu0 %v240_v7 }
  0x37   :  { %219 = vmatprep.subr.bf16.mxu0 %v313_v0 }
  0x3a   :  { %220 = vmatpush3.bf16.msra.mxu0 %v241_v8 }
  0x3d   :  { %222 = vmatmul.mubr.bf16.vlgmr.msra.gmra.mxu0 %v242_v9 }
  0xfd   :  { %v157_v11 = vpop.f32.mrf.mxu0 }
  0xfe   :  { %v158_v12 = vadd.f32 %v186_v10, %v157_v11 }
  0xff   :  { %v223_v13 = vpop.f32.mrf.mxu0 }
 0x100   :  { %v164_v14 = vmax.f32 %v158_v12, 0.0 }
 0x101   :  { %v160_v15 = vpop.f32.mrf.mxu0 }
 0x102   :  { %166 = vst [vmem:[#allocation7] sm:$0xff] %v164_v14  ;;  %v161_v16 = vadd.f32 %v186_v10, %v160_v15 }
 0x103   :  { %v224_v17 = vpop.f32.mrf.mxu0 }
 0x104   :  { %v165_v18 = vmax.f32 %v161_v16, 0.0 }
 0x106   :  { %167 = vst [vmem:[#allocation7 + $0x8] sm:$0xff] %v165_v18 }
 0x107   :  { %294 = shalt.err (!%p291_p0)
}
 0x108   :  { %s316_s2 = smov 128   ;;  %s317_s27 = smov 8  }
 0x109   :  { %179 = dma.vmem_to_hbm [thread:$0]  %s174_s25, 256, %s353_s3, [#allocation4], %s316_s2, %s316_s2, %s317_s27  }
 0x10a   :  { %307 = dma.done.wait [#allocation4], 256  }
 0x10b   :  { %308 = vsyncadd [#allocation4], 4294967040 }
 0x10c   :  { %183 = vsyncpa [#allocation3], 1 }
 0x10d   :  { %184 = vsyncpa [#allocation6], 1 }
 0x10e   :  { %185 = vsyncpa [#allocation4], 1 }

</bundles_post_ra>
